<compile_context>
chip_gen: v7x
topology: tpu7x:2x2x1
jax: 0.10.0
libtpu: 0.0.40
codegen_flags: <defaults>
</compile_context>

<pallas_src>
import functools

import jax
import jax.numpy as jnp
from jax.experimental import pallas as pl
from jax.experimental.pallas import tpu as pltpu


def _temporal_attention_kernel(frames_ref, text_ref, wa_ref, ua_ref, va_ref,
                               ba_ref, out_ref, *, inv_attention: bool):
    # frames_ref: (bb*T, D)  matmul dtype (pre-flattened rows)
    # text_ref:   (bb, D)    matmul dtype
    # wa_ref/ua_ref: (D, H)  matmul dtype (constant block across the grid)
    # va_ref/ba_ref: (1, H)  f32
    # out_ref:    (bb, D)    f32
    bb, d = text_ref.shape
    t = frames_ref.shape[0] // bb
    h = wa_ref.shape[1]

    frames = frames_ref[...]                                          # (bb*T, D)

    # --- Ws: one MXU pass over all bb*T rows (no reshape of the packed operand)
    ws = jnp.dot(frames, wa_ref[...],
                 preferred_element_type=jnp.float32)                  # (bb*T, H) f32

    # --- Uh, with the bias folded once per batch row -------------------------
    bias = jnp.dot(text_ref[...], ua_ref[...],
                   preferred_element_type=jnp.float32) + ba_ref[...]  # (bb, H) f32

    # f32 re-view of the Ws result: free when T % 8 == 0 (f32 sublane pack),
    # otherwise a bounded in-VMEM copy (never an extra HBM pass).
    z = jnp.tanh(ws.reshape(bb, t, h) + bias[:, None, :])             # (bb, T, H) f32

    # --- scores: VPU multiply + lane reduce over H (no degenerate N=1 matvec)
    scores = jnp.sum(z * va_ref[...], axis=-1, keepdims=True)         # (bb, T, 1) f32
    if inv_attention:
        scores = -scores

    # --- softmax over T (sublane axis), all f32 -------------------------------
    m = jnp.max(scores, axis=1, keepdims=True)                        # (bb, 1, 1)
    e = jnp.exp(scores - m)                                           # (bb, T, 1)
    att = e * pl.reciprocal(jnp.sum(e, axis=1, keepdims=True), approx=True)

    # --- weighted sum on the VPU/XLU: att stays f32, frames promoted to f32 ---
    # (f32 pack is 8, so the (bb*T, D) -> (bb, T, D) re-view is free when
    # T % 8 == 0; the bf16 frames block itself is never reshaped.)
    frames_f32 = frames.astype(jnp.float32).reshape(bb, t, d)         # (bb, T, D)
    out_ref[...] = jnp.sum(att * frames_f32, axis=1).astype(out_ref.dtype)


def _round_up(x: int, m: int) -> int:
    return ((x + m - 1) // m) * m


def temporal_attention(hidden_frames, hidden_text, Wa, Ua, Va, ba,
                       inv_attention: bool = False,
                       matmul_dtype=jnp.bfloat16):
    """hidden_frames: (B, T, D); hidden_text: (B, D) -> (B, D) f32.

    matmul_dtype (default bf16 — native on every TPU generation's MXU) applies
    only to the MXU operands (frames, text, Wa, Ua); accumulation, softmax and
    the weighted sum stay f32.
    """
    B, T, D = hidden_frames.shape
    H = Wa.shape[1]
    itemsize = jnp.dtype(matmul_dtype).itemsize

    # --- per-generation VMEM budget -------------------------------------------
    try:
        vmem_cap = int(pltpu.get_tpu_info().vmem_capacity_bytes)
    except Exception:
        vmem_cap = 64 << 20          # conservative (v7x physical per-TC VMEM)
    budget = vmem_cap * 3 // 4

    def vmem_bytes(bb):
        return (2 * bb * T * D * itemsize        # frames block (double-buffered)
                + 2 * bb * D * itemsize          # text block
                + 2 * bb * D * 4                 # output block (f32)
                + 2 * bb * T * H * 4             # ws / z f32 intermediates
                + 2 * bb * T * D * 4             # f32 frames copy + weighted
                + 2 * 2 * D * H * itemsize       # Wa, Ua (double-buffered)
                + 16 * H * 4 + (1 << 20))        # va/ba + slack

    # --- batch-block selection: ~256 Ws rows per MXU pass, >= 2 (ideally >= 4)
    # grid steps when B allows (DMA/compute overlap + v7x megacore), VMEM fit.
    if B <= 8:
        bb = B                                    # single step; blocks == full dims
    else:
        bb = max(8, _round_up(-(-256 // T), 8))
        if B >= 32:
            bb = min(bb, max(8, (B // 4) // 8 * 8))   # keep >= ~4 grid steps
        else:
            bb = 8                                    # keep >= 2 grid steps
        while bb > 8 and vmem_bytes(bb) > budget:
            bb -= 8
    Bp = _round_up(B, bb)
    grid = Bp // bb
    # TODO(synk): very large T*D or D*H would additionally need a T/H grid axis
    # and pl.Buffered(1) single-buffering of the constant-index weight blocks to
    # stay inside v7x's 64 MiB VMEM; not needed at these sizes.

    # --- host-side prep: single cast, frames pre-flattened (free re-view), -----
    # --- batch pad only (no D/H padding, no extra HBM passes). -----------------
    frames = hidden_frames.astype(matmul_dtype).reshape(B * T, D)
    text = hidden_text.astype(matmul_dtype)
    if Bp != B:
        frames = jnp.pad(frames, ((0, (Bp - B) * T), (0, 0)))
        text = jnp.pad(text, ((0, Bp - B), (0, 0)))
    wa = Wa.astype(matmul_dtype)
    ua = Ua.astype(matmul_dtype)
    va = Va.astype(jnp.float32).reshape(1, H)
    ba2 = ba.astype(jnp.float32).reshape(1, H)

    kernel = functools.partial(_temporal_attention_kernel,
                               inv_attention=bool(inv_attention))

    # --- advisory cost estimate (weights DMA'd once; frames at true size) ------
    flops = (2 * Bp * T * D * H          # Ws matmul
             + 2 * Bp * D * H            # Uh matmul
             + 3 * Bp * T * H            # bias add + Va mul + H reduce
             + 3 * Bp * T * D)           # weighted sum
    transcendentals = Bp * T * H + Bp * T
    bytes_accessed = (Bp * T * D * itemsize      # frames, read once
                      + Bp * D * itemsize        # text
                      + 2 * D * H * itemsize     # Wa + Ua (constant index map)
                      + 2 * H * 4                # Va + ba
                      + Bp * D * 4)              # output

    # --- scoped VMEM: raise above v5e's 16 MiB default only if needed, ---------
    # --- clamp to the attached generation's physical capacity. -----------------
    compiler_kwargs = dict(dimension_semantics=("parallel",))
    vmem_request = int(vmem_bytes(bb) * 5 // 4)
    if vmem_request > (14 << 20):
        compiler_kwargs["vmem_limit_bytes"] = int(min(vmem_request,
                                                      vmem_cap * 7 // 8))

    out = pl.pallas_call(
        kernel,
        out_shape=jax.ShapeDtypeStruct((Bp, D), jnp.float32),
        grid_spec=pltpu.PrefetchScalarGridSpec(
            num_scalar_prefetch=0,
            grid=(grid,),
            in_specs=[
                pl.BlockSpec((bb * T, D), lambda b: (b, 0)),   # frames (flat)
                pl.BlockSpec((bb, D), lambda b: (b, 0)),       # text
                pl.BlockSpec((D, H), lambda b: (0, 0)),        # Wa (constant block)
                pl.BlockSpec((D, H), lambda b: (0, 0)),        # Ua (constant block)
                pl.BlockSpec((1, H), lambda b: (0, 0)),        # Va
                pl.BlockSpec((1, H), lambda b: (0, 0)),        # ba
            ],
            out_specs=pl.BlockSpec((bb, D), lambda b: (b, 0)),
        ),
        compiler_params=pltpu.CompilerParams(**compiler_kwargs),
        cost_estimate=pl.CostEstimate(flops=int(flops),
                                      transcendentals=int(transcendentals),
                                      bytes_accessed=int(bytes_accessed)),
    )(frames, text, wa, ua, va, ba2)

    return out[:B]


def temporal_attention_ref(hidden_frames, hidden_text, Wa, Ua, Va, ba,
                           inv_attention: bool = False):
    """Plain-JAX reference mirroring the PyTorch forward."""
    Uh = hidden_text @ Ua                          # (B, H)
    Uh = Uh[:, None, :]                            # (B, 1, H)
    Ws = hidden_frames @ Wa                        # (B, T, H)
    att = jnp.tanh(Ws + Uh + ba) @ Va              # (B, T)
    if inv_attention:
        att = -att
    att = jax.nn.softmax(att, axis=1)[:, :, None]  # (B, T, 1)
    return jnp.sum(att * hidden_frames, axis=1)    # (B, D)


if __name__ == "__main__":
    # Small, TPU-friendly shapes consistent with the module's forward.
    B, T, D, H = 2, 8, 32, 32   # batch, seq(frames), input_size, hidden_size

    key = jax.random.PRNGKey(0)
    k1, k2, k3, k4, k5 = jax.random.split(key, 5)

    hidden_frames = jax.random.normal(k1, (B, T, D), dtype=jnp.float32)
    hidden_text = jax.random.normal(k2, (B, D), dtype=jnp.float32)

    # Deterministic parameter init matching the PyTorch module:
    #   Wa, Ua, Va ~ N(0, 0.01);  ba = 0
    Wa = 0.01 * jax.random.normal(k3, (D, H), dtype=jnp.float32)
    Ua = 0.01 * jax.random.normal(k4, (D, H), dtype=jnp.float32)
    Va = 0.01 * jax.random.normal(k5, (H,), dtype=jnp.float32)
    ba = jnp.zeros((1, 1, H), dtype=jnp.float32)

    ref = temporal_attention_ref(hidden_frames, hidden_text, Wa, Ua, Va, ba)

    # Default path: bf16 MXU operands (native on v5e/v6e/v7x), f32 elsewhere.
    out = jax.block_until_ready(
        temporal_attention(hidden_frames, hidden_text, Wa, Ua, Va, ba))
    assert out.shape == (B, D)
    assert jnp.allclose(out, ref, atol=3e-2, rtol=3e-2), (
        f"max abs err {jnp.max(jnp.abs(out - ref))}")

    # f32 MXU-operand path (tighter tolerance; only the approx EUP reciprocal
    # in the softmax denominator differs from the reference).
    out_f32 = jax.block_until_ready(
        temporal_attention(hidden_frames, hidden_text, Wa, Ua, Va, ba,
                           matmul_dtype=jnp.float32))
    assert jnp.allclose(out_f32, ref, atol=5e-3, rtol=5e-3), (
        f"max abs err {jnp.max(jnp.abs(out_f32 - ref))}")

    # inv_attention branch.
    ref_inv = temporal_attention_ref(hidden_frames, hidden_text, Wa, Ua, Va,
                                     ba, inv_attention=True)
    out_inv = jax.block_until_ready(
        temporal_attention(hidden_frames, hidden_text, Wa, Ua, Va, ba,
                           inv_attention=True))
    assert jnp.allclose(out_inv, ref_inv, atol=3e-2, rtol=3e-2), (
        f"max abs err {jnp.max(jnp.abs(out_inv - ref_inv))}")

    print("KERNEL_OK")
</pallas_src>

<mosaic_0001>
module attributes {stable_mosaic.version = 11 : i64} {
  func.func @_temporal_attention_kernel(%arg0: i32, %arg1: memref<16x32xbf16, #tpu.memory_space<vmem>>, %arg2: memref<2x32xbf16, #tpu.memory_space<vmem>>, %arg3: memref<32x32xbf16, #tpu.memory_space<vmem>>, %arg4: memref<32x32xbf16, #tpu.memory_space<vmem>>, %arg5: memref<1x32xf32, #tpu.memory_space<vmem>>, %arg6: memref<1x32xf32, #tpu.memory_space<vmem>>, %arg7: memref<2x32xf32, #tpu.memory_space<vmem>>) attributes {dimension_semantics = [#tpu.dimension_semantics<parallel>], iteration_bounds = array<i64: 1>, scalar_prefetch = 0 : i64, scratch_operands = 0 : i64, tpu.core_type = #tpu.core_type<tc>, window_params = [{transform_indices = @transform_0, window_bounds = array<i64: 16, 32>}, {transform_indices = @transform_1, window_bounds = array<i64: 2, 32>}, {pipeline_mode = #tpu.pipeline_mode<synchronous>, transform_indices = @transform_2, window_bounds = array<i64: 32, 32>}, {pipeline_mode = #tpu.pipeline_mode<synchronous>, transform_indices = @transform_3, window_bounds = array<i64: 32, 32>}, {pipeline_mode = #tpu.pipeline_mode<synchronous>, transform_indices = @transform_4, window_bounds = array<i64: 1, 32>}, {pipeline_mode = #tpu.pipeline_mode<synchronous>, transform_indices = @transform_5, window_bounds = array<i64: 1, 32>}, {transform_indices = @transform_6, window_bounds = array<i64: 2, 32>}]} {
    %c0 = arith.constant 0 : index
    %c0_0 = arith.constant 0 : index
    %0 = vector.load %arg1[%c0, %c0_0] : memref<16x32xbf16, #tpu.memory_space<vmem>>, vector<16x32xbf16>
    %c0_1 = arith.constant 0 : index
    %c0_2 = arith.constant 0 : index
    %1 = vector.load %arg3[%c0_1, %c0_2] : memref<32x32xbf16, #tpu.memory_space<vmem>>, vector<32x32xbf16>
    %cst = arith.constant dense<0.000000e+00> : vector<16x32xf32>
    %2 = tpu.matmul %0, %1, %cst {dimension_numbers = #tpu.dot_dimension_numbers<[1], [0], [0], [1], [0, 0, 1, 1], [], []>} : vector<16x32xbf16>, vector<32x32xbf16>, vector<16x32xf32> -> vector<16x32xf32>
    %c0_3 = arith.constant 0 : index
    %c0_4 = arith.constant 0 : index
    %3 = vector.load %arg2[%c0_3, %c0_4] : memref<2x32xbf16, #tpu.memory_space<vmem>>, vector<2x32xbf16>
    %c0_5 = arith.constant 0 : index
    %c0_6 = arith.constant 0 : index
    %4 = vector.load %arg4[%c0_5, %c0_6] : memref<32x32xbf16, #tpu.memory_space<vmem>>, vector<32x32xbf16>
    %cst_7 = arith.constant dense<0.000000e+00> : vector<2x32xf32>
    %5 = tpu.matmul %3, %4, %cst_7 {dimension_numbers = #tpu.dot_dimension_numbers<[1], [0], [0], [1], [0, 0, 1, 1], [], []>} : vector<2x32xbf16>, vector<32x32xbf16>, vector<2x32xf32> -> vector<2x32xf32>
    %c0_8 = arith.constant 0 : index
    %c0_9 = arith.constant 0 : index
    %6 = vector.load %arg6[%c0_8, %c0_9] : memref<1x32xf32, #tpu.memory_space<vmem>>, vector<1x32xf32>
    %7 = vector.broadcast %6 : vector<1x32xf32> to vector<2x32xf32>
    %8 = arith.addf %5, %7 : vector<2x32xf32>
    %9 = vector.shape_cast %2 : vector<16x32xf32> to vector<2x8x32xf32>
    %10 = vector.shape_cast %8 : vector<2x32xf32> to vector<2x1x32xf32>
    %11 = vector.broadcast %10 : vector<2x1x32xf32> to vector<2x8x32xf32>
    %12 = arith.addf %9, %11 : vector<2x8x32xf32>
    %13 = math.tanh %12 : vector<2x8x32xf32>
    %c0_10 = arith.constant 0 : index
    %c0_11 = arith.constant 0 : index
    %14 = vector.load %arg5[%c0_10, %c0_11] : memref<1x32xf32, #tpu.memory_space<vmem>>, vector<1x32xf32>
    %15 = vector.shape_cast %14 : vector<1x32xf32> to vector<1x1x32xf32>
    %16 = vector.broadcast %15 : vector<1x1x32xf32> to vector<2x8x32xf32>
    %17 = arith.mulf %13, %16 : vector<2x8x32xf32>
    %cst_12 = arith.constant dense<0.000000e+00> : vector<2x8xf32>
    %18 = vector.multi_reduction <add>, %17, %cst_12 [2] : vector<2x8x32xf32> to vector<2x8xf32>
    %19 = vector.shape_cast %18 : vector<2x8xf32> to vector<2x8x1xf32>
    %cst_13 = arith.constant dense<0xFF800000> : vector<2x1xf32>
    %20 = vector.multi_reduction <maximumf>, %19, %cst_13 [1] : vector<2x8x1xf32> to vector<2x1xf32>
    %21 = vector.shape_cast %20 : vector<2x1xf32> to vector<2x1x1xf32>
    %22 = vector.broadcast %21 : vector<2x1x1xf32> to vector<2x8x1xf32>
    %23 = arith.subf %19, %22 : vector<2x8x1xf32>
    %24 = math.exp %23 : vector<2x8x1xf32>
    %cst_14 = arith.constant dense<0.000000e+00> : vector<2x1xf32>
    %25 = vector.multi_reduction <add>, %24, %cst_14 [1] : vector<2x8x1xf32> to vector<2x1xf32>
    %26 = vector.shape_cast %25 : vector<2x1xf32> to vector<2x1x1xf32>
    %27 = tpu.reciprocal %26 {approx = true} : vector<2x1x1xf32> -> vector<2x1x1xf32>
    %28 = vector.broadcast %27 : vector<2x1x1xf32> to vector<2x8x1xf32>
    %29 = arith.mulf %24, %28 : vector<2x8x1xf32>
    %30 = arith.extf %0 : vector<16x32xbf16> to vector<16x32xf32>
    %31 = vector.shape_cast %30 : vector<16x32xf32> to vector<2x8x32xf32>
    %32 = vector.broadcast %29 : vector<2x8x1xf32> to vector<2x8x32xf32>
    %33 = arith.mulf %32, %31 : vector<2x8x32xf32>
    %cst_15 = arith.constant dense<0.000000e+00> : vector<2x32xf32>
    %34 = vector.multi_reduction <add>, %33, %cst_15 [1] : vector<2x8x32xf32> to vector<2x32xf32>
    %c0_16 = arith.constant 0 : index
    %c0_17 = arith.constant 0 : index
    %35 = vector.load %arg7[%c0_16, %c0_17] : memref<2x32xf32, #tpu.memory_space<vmem>>, vector<2x32xf32>
    tpu.vector_store %arg7[%c0_16, %c0_17], %34 {strides = array<i32>} : memref<2x32xf32, #tpu.memory_space<vmem>>, vector<2x32xf32>,
    return
  }
  func.func @transform_0(%arg0: i32) -> (i32, i32) {
    %c0_i32 = arith.constant 0 : i32
    %c0_i32_0 = arith.constant 0 : i32
    return %arg0, %c0_i32 : i32, i32
  }
  func.func @transform_1(%arg0: i32) -> (i32, i32) {
    %c0_i32 = arith.constant 0 : i32
    %c0_i32_0 = arith.constant 0 : i32
    return %arg0, %c0_i32 : i32, i32
  }
  func.func @transform_2(%arg0: i32) -> (i32, i32) {
    %c0_i32 = arith.constant 0 : i32
    %c0_i32_0 = arith.constant 0 : i32
    %c0_i32_1 = arith.constant 0 : i32
    return %c0_i32, %c0_i32_0 : i32, i32
  }
  func.func @transform_3(%arg0: i32) -> (i32, i32) {
    %c0_i32 = arith.constant 0 : i32
    %c0_i32_0 = arith.constant 0 : i32
    %c0_i32_1 = arith.constant 0 : i32
    return %c0_i32, %c0_i32_0 : i32, i32
  }
  func.func @transform_4(%arg0: i32) -> (i32, i32) {
    %c0_i32 = arith.constant 0 : i32
    %c0_i32_0 = arith.constant 0 : i32
    %c0_i32_1 = arith.constant 0 : i32
    return %c0_i32, %c0_i32_0 : i32, i32
  }
  func.func @transform_5(%arg0: i32) -> (i32, i32) {
    %c0_i32 = arith.constant 0 : i32
    %c0_i32_0 = arith.constant 0 : i32
    %c0_i32_1 = arith.constant 0 : i32
    return %c0_i32, %c0_i32_0 : i32, i32
  }
  func.func @transform_6(%arg0: i32) -> (i32, i32) {
    %c0_i32 = arith.constant 0 : i32
    %c0_i32_0 = arith.constant 0 : i32
    return %arg0, %c0_i32 : i32, i32
  }
}

</mosaic_0001>

<bundles_post_ra>
// kernel: tpu_custom_call.1
= control target key start
LH: loop header
LB: loop body
LE: loop exit
PB: predicated region body
PF: predicated region fallthrough
CT: control target
= control target key end

     0   :  { %11 = vsyncpa [#allocation3], 0  ;;  %s608_s0 = inlined_call_operand.hbm [shape: bf16[16,32], index: 0, kind: input, shape index: {}]   ;;  %s609_s1 = inlined_call_operand.vmem [shape: bf16[2,32], index: 1, kind: input, shape index: {}]   ;;  %s610_s2 = inlined_call_operand.hbm [shape: bf16[32,32], index: 2, kind: input, shape index: {}]   ;;  %s611_s3 = inlined_call_operand.hbm [shape: bf16[32,32], index: 3, kind: input, shape index: {}]   ;;  %s612_s4 = inlined_call_operand.vmem [shape: f32[1,32], index: 4, kind: input, shape index: {}]   ;;  %s613_s5 = inlined_call_operand.vmem [shape: f32[1,32], index: 5, kind: input, shape index: {}]   ;;  %s614_s6 = inlined_call_operand.hbm [shape: f32[2,32], index: 6, kind: output, shape index: {}]  }
   0x1   :  { %12 = vsyncpa [#allocation6], 0 }
   0x2   :  { %13 = vsyncpa [#allocation4], 0  ;;  %s480_s21 = smov [#allocation5]   ;;  %s481_s23 = smov [#allocation2]  }
   0x3   :  { %s33_s22 = sshll.u32 %s480_s21, 4  ;;  %s19_s24 = sshll.u32 %s481_s23, 4  ;;  %s34_s22 = int_to_ptr.vmem [resolvable:$true] %s33_s22  ;;  %s524_s24 = int_to_ptr.vmem [resolvable:$true] %s19_s24 }
   0x4   :  { %s386_s27 = scalar_lea.hbm %s610_s2, 256 }
   0x5   :  { %p387_p0 = scmp.ne.s32.totalorder %s610_s2, %s386_s27  ;;  %p390_p1 = scmp.lt.u32.totalorder %s386_s27, %s610_s2 }
   0x7   :  { %p392_p2 = pnand %p390_p1, %p387_p0 }
   0x9   :  { %395 = shalt.err (!%p392_p2)
}
   0xa   :  { %s396_s8 = scalar_lea.vmem %s34_s22, 256  ;;  %p401_p4 = scmp.lt.s32.totalorder %s34_s22, %s34_s22 }
   0xb   :  { %p397_p3 = scmp.ne.s32.totalorder %s34_s22, %s396_s8  ;;  %p402_p5 = scmp.lt.s32.totalorder %s396_s8, %s396_s8 }
   0xd   :  { %p403_p6 = por %p402_p5, %p401_p4 }
   0xf   :  { %p404_p7 = pnand %p403_p6, %p397_p3 }
  0x11   :  { %407 = shalt.err (!%p404_p7)
}
  0x12   :  { %s482_s9 = smov 64   ;;  %s483_s10 = smov 4  }
  0x13   :  { %39 = dma.hbm_to_vmem [thread:$0]  %s610_s2, 256, %s34_s22, [#allocation6], %s482_s9, %s482_s9, %s483_s10  }
  0x14   :  { %s408_s15 = scalar_lea.hbm %s608_s0, 128 }
  0x15   :  { %p409_p8 = scmp.ne.s32.totalorder %s608_s0, %s408_s15  ;;  %p412_p9 = scmp.lt.u32.totalorder %s408_s15, %s608_s0 }
  0x17   :  { %p414_p10 = pnand %p412_p9, %p409_p8 }
  0x19   :  { %417 = shalt.err (!%p414_p10)
}
  0x1a   :  { %s418_s20 = scalar_lea.vmem %s524_s24, 128  ;;  %p423_p12 = scmp.lt.s32.totalorder %s524_s24, %s524_s24 }
  0x1b   :  { %p419_p11 = scmp.ne.s32.totalorder %s524_s24, %s418_s20  ;;  %p424_p13 = scmp.lt.s32.totalorder %s418_s20, %s418_s20 }
  0x1d   :  { %p425_p0 = por %p424_p13, %p423_p12 }
  0x1f   :  { %p426_p1 = pnand %p425_p0, %p419_p11 }
  0x21   :  { %429 = shalt.err (!%p426_p1)
}
  0x22   :  { %25 = dma.hbm_to_vmem [thread:$0]  %s608_s0, 128, %s524_s24, [#allocation3], %s482_s9, %s482_s9, %s483_s10  }
  0x23   :  { %s484_s22 = smov [#allocation7]   ;;  %s430_s27 = scalar_lea.hbm %s611_s3, 256 }
  0x24   :  { %s45_s23 = sshll.u32 %s484_s22, 4  ;;  %p431_p2 = scmp.ne.s32.totalorder %s611_s3, %s430_s27  ;;  %s46_s23 = int_to_ptr.vmem [resolvable:$true] %s45_s23 }
  0x25   :  { %p434_p3 = scmp.lt.u32.totalorder %s430_s27, %s611_s3 }
  0x27   :  { %p436_p4 = pnand %p434_p3, %p431_p2 }
  0x29   :  { %439 = shalt.err (!%p436_p4)
}
  0x2a   :  { %s440_s8 = scalar_lea.vmem %s46_s23, 256  ;;  %p445_p6 = scmp.lt.s32.totalorder %s46_s23, %s46_s23 }
  0x2b   :  { %p441_p5 = scmp.ne.s32.totalorder %s46_s23, %s440_s8  ;;  %p446_p7 = scmp.lt.s32.totalorder %s440_s8, %s440_s8 }
  0x2d   :  { %p447_p8 = por %p446_p7, %p445_p6 }
  0x2f   :  { %p448_p9 = pnand %p447_p8, %p441_p5 }
  0x31   :  { %451 = shalt.err (!%p448_p9)
}
  0x32   :  { %51 = dma.hbm_to_vmem [thread:$0]  %s611_s3, 256, %s46_s23, [#allocation6], %s482_s9, %s482_s9, %s483_s10  }
  0x33   :  { %474 = dma.done.wait [#allocation3], 128  }
  0x34   :  { %475 = vsyncadd [#allocation3], 4294967168 }
  0x35   :  { %476 = dma.done.wait [#allocation6], 512  }
  0x36   :  { %477 = vsyncadd [#allocation6], 4294966784  ;;  %v485_v0 = vmov 0.0   ;;  %vm486_vm0 = vmmov 0   ;;  %v368_v1 = vld [vmem:[#allocation7] sm:$0xff]   ;;  %v369_v2 = vld [vmem:[#allocation7 + $0x8] sm:$0xff]   ;;  %v205_v9 = vlaneseq }
  0x37   :  { %351 = vmatprep.subr.bf16.mxu1 %v485_v0  ;;  %343 = vmatprep.subr.bf16.mxu0 %v485_v0  ;;  %v370_v3 = vld [vmem:[#allocation5] sm:$0xff]   ;;  %v371_v4 = vld [vmem:[#allocation5 + $0x8] sm:$0xff]   ;;  %v576_v5 = vld [vmem:[#allocation2] sm:$0xff]   ;;  %vm89_vm1 = vcmask 261120   ;;  %v487_v7 = vmov 1966171168  }
  0x38   :  { %355 = vmatprep.mubr.msk.bf16.mxu1 %vm486_vm0, %v485_v0  ;;  %347 = vmatprep.mubr.msk.bf16.mxu0 %vm486_vm0, %v485_v0  ;;  %v134_v6 = vld [vmem:[%s609_s1] sm:$0x1]  ;;  %v203_v8 = vunpack.c.l.s4 %v487_v7  ;;  %v206_v11 = vshrl.u32 %v205_v9, 7  ;;  %vm307_vm2 = vcmask 1041409   ;;  %vm310_vm3 = vcmask 254976  }
  0x39   :  { %352 = vmatpush3.bf16.msra.mxu1 %v368_v1  ;;  %344 = vmatpush3.bf16.msra.mxu0 %v370_v3  ;;  %v332_v12 = vld [vmem:[%s613_s5] ss:$0 sm:$0xff] }
  0x3a   :  { %353 = vmatprep.subr.bf16.mxu1 %v485_v0  ;;  %345 = vmatprep.subr.bf16.mxu0 %v485_v0  ;;  %v204_v10 = vunpack.c.0.s8 %v203_v8  ;;  %v226_v21 = vsub.s32 0, %v206_v11  ;;  %v336_v32 = vld [vmem:[%s612_s4] ss:$0 sm:$0xff]  ;;  %v287_v8 = vunpack.c.l.bf16 %v576_v5  ;;  %s488_s4 = smov [#allocation8]  }
  0x3b   :  { %s318_s12 = sshll.u32 %s488_s4, 4  ;;  %s319_s12 = int_to_ptr.vmem [resolvable:$true] %s318_s12 }
  0x3c   :  { %v207_v13 = vsub.s32 %v204_v10, %v206_v11  ;;  %v288_v11 = vunpack.c.h.bf16 %v576_v5  ;;  %s452_s13 = scalar_lea.vmem %s319_s12, 32  ;;  %p457_p11 = scmp.lt.s32.totalorder %s319_s12, %s319_s12 }
  0x3d   :  { %354 = vmatpush3.bf16.msra.mxu1 %v369_v2  ;;  %346 = vmatpush3.bf16.msra.mxu0 %v371_v4  ;;  %p453_p10 = scmp.ne.s32.totalorder %s319_s12, %s452_s13  ;;  %p458_p12 = scmp.lt.s32.totalorder %s452_s13, %s452_s13 }
  0x3f   :  { %p459_p13 = por %p458_p12, %p457_p11 }
  0x40   :  { %356 = vmatmul.mubr.msk.bf16.vlgmr.msra.gmra.mrb[0].mxu1 %vm89_vm1, %v134_v6  ;;  %348 = vmatmul.mubr.msk.bf16.vlgmr.msra.gmra.mrb[0].mxu0 %vm89_vm1, %v576_v5 }
  0x41   :  { %p460_p0 = pnand %p459_p13, %p453_p10 }
 0x113   :  { %v195_v14 = vpop.f32.mrb[0].mxu1  ;;  %v127_v18 = vpop.f32.mrb[0].mxu0 }
 0x114   :  { %v196_v15 = vadd.f32 %v332_v12, %v195_v14  ;;  %v357_v16 = vpop.f32.mrb[1].mxu1  ;;  %v349_v22 = vpop.f32.mrb[1].mxu0 }
 0x115   :  { %v198_v17 = vpop.f32.mrb[2].mxu1  ;;  %v130_v23 = vpop.f32.mrb[2].mxu0 }
 0x116   :  { %v208_v19 = vrot.slane %v196_v15, %v207_v13  ;;  %v358_v20 = vpop.f32.mrb[3].mxu1  ;;  %v350_v26 = vpop.f32.mrb[3].mxu0 }
 0x118   :  { %v209_v24 = vcombine.high %v208_v19, %v208_v19  ;;  %v216_v25 = vrot.slane %v208_v19, %v207_v13 }
 0x11a   :  { %v227_v27 = vrot.slane %v216_v25, %v226_v21  ;;  %v223_v28 = vrot.slane %v209_v24, %v207_v13 }
 0x11c   :  { %v234_v29 = vadd.f32 %v227_v27, %v127_v18  ;;  %v231_v30 = vrot.slane %v223_v28, %v226_v21 }
 0x11e   :  { %374 = vtanh.f32 %v234_v29  ;;  %v235_v31 = vadd.f32 %v231_v30, %v130_v23 }
 0x120   :  { %376 = vtanh.f32 %v235_v31 }
 0x128   :  { %v375_v33 = vpop.eup %374 }
 0x129   :  { %v245_v34 = vmul.f32 %v375_v33, %v336_v32 }
 0x12a   :  { %v377_v35 = vpop.eup %376 }
 0x12b   :  { %v247_v36 = vsel %vm89_vm1, %v245_v34, 0.0  ;;  %v246_v37 = vmul.f32 %v377_v35, %v336_v32 }
 0x12c   :  { %248 = vadd.xlane.f32.xlu0 %v247_v36 }
 0x12d   :  { %v250_v38 = vsel %vm89_vm1, %v246_v37, 0.0 }
 0x130   :  { %251 = vadd.xlane.f32.xlu0 %v250_v38 }
 0x1b9   :  { %v249_v39 = vpop.xlane.xlu0 %248 }
 0x1ba   :  { %v253_v40 = vrot.slane %v249_v39, 4 }
 0x1bc   :  { %v254_v41 = vmax.f32 %v249_v39, %v253_v40 }
 0x1bd   :  { %v252_v42 = vpop.xlane.xlu0 %251 }
 0x1be   :  { %v255_v43 = vrot.slane %v254_v41, 2  ;;  %v259_v44 = vrot.slane %v252_v42, 4 }
 0x1c0   :  { %v256_v45 = vmax.f32 %v254_v41, %v255_v43  ;;  %v260_v46 = vmax.f32 %v252_v42, %v259_v44 }
 0x1c2   :  { %v257_v47 = vrot.slane %v256_v45, 1  ;;  %v261_v48 = vrot.slane %v260_v46, 2 }
 0x1c4   :  { %v258_v49 = vmax.f32 %v256_v45, %v257_v47  ;;  %v262_v50 = vmax.f32 %v260_v46, %v261_v48 }
 0x1c6   :  { %v265_v51 = vsub.f32 %v249_v39, %v258_v49  ;;  %v263_v52 = vrot.slane %v262_v50, 1 }
 0x1c8   :  { %v267_v53 = vmul.f32 1.442695, %v265_v51  ;;  %v264_v54 = vmax.f32 %v262_v50, %v263_v52 }
 0x1ca   :  { %378 = vpow2.f32 %v267_v53  ;;  %v266_v55 = vsub.f32 %v252_v42, %v264_v54 }
 0x1cc   :  { %v269_v56 = vmul.f32 1.442695, %v266_v55 }
 0x1ce   :  { %380 = vpow2.f32 %v269_v56 }
 0x1d4   :  { %v379_v57 = vpop.eup %378 }
 0x1d5   :  { %v271_v58 = vrot.slane %v379_v57, 4 }
 0x1d7   :  { %v272_v59 = vadd.f32 %v379_v57, %v271_v58 }
 0x1d8   :  { %v381_v60 = vpop.eup %380 }
 0x1d9   :  { %v273_v61 = vrot.slane %v272_v59, 2  ;;  %v277_v62 = vrot.slane %v381_v60, 4 }
 0x1db   :  { %v278_v63 = vadd.f32 %v381_v60, %v277_v62  ;;  %v274_v0 = vadd.f32 %v273_v61, %v272_v59 }
 0x1dd   :  { %v279_v1 = vrot.slane %v278_v63, 2  ;;  %v275_v2 = vrot.slane %v274_v0, 1 }
 0x1df   :  { %v280_v3 = vadd.f32 %v279_v1, %v278_v63  ;;  %v276_v4 = vadd.f32 %v275_v2, %v274_v0 }
 0x1e1   :  { %v281_v6 = vrot.slane %v280_v3, 1  ;;  %382 = vrcp.f32 %v276_v4 }
 0x1e3   :  { %v282_v7 = vadd.f32 %v281_v6, %v280_v3 }
 0x1e5   :  { %384 = vrcp.f32 %v282_v7 }
 0x1eb   :  { %v383_v9 = vpop.eup %382 }
 0x1ec   :  { %v285_v10 = vmul.f32 %v383_v9, %v379_v57 }
 0x1ee   :  { %v289_v12 = vmul.f32 %v287_v8, %v285_v10 }
 0x1ef   :  { %v385_v13 = vpop.eup %384 }
 0x1f0   :  { %v286_v14 = vmul.f32 %v385_v13, %v381_v60  ;;  %v291_v15 = vsel %vm89_vm1, %v289_v12, 0.0 }
 0x1f1   :  { %v292_v16 = vrot.slane %v291_v15, 4 }
 0x1f2   :  { %v290_v17 = vmul.f32 %v288_v11, %v286_v14 }
 0x1f3   :  { %v293_v18 = vadd.f32 %v292_v16, %v291_v15 }
 0x1f4   :  { %v298_v19 = vsel %vm89_vm1, %v290_v17, 0.0 }
 0x1f5   :  { %v294_v20 = vrot.slane %v293_v18, 2  ;;  %v299_v21 = vrot.slane %v298_v19, 4 }
 0x1f7   :  { %v295_v22 = vadd.f32 %v294_v20, %v293_v18  ;;  %v300_v23 = vadd.f32 %v299_v21, %v298_v19 }
 0x1f9   :  { %v301_v24 = vrot.slane %v300_v23, 2  ;;  %v296_v25 = vrot.slane %v295_v22, 1 }
 0x1fb   :  { %v302_v26 = vadd.f32 %v301_v24, %v300_v23  ;;  %v297_v5 = vadd.f32 %v296_v25, %v295_v22 }
 0x1fd   :  { %v303_v27 = vrot.slane %v302_v26, 1 }
 0x1ff   :  { %v304_v28 = vadd.f32 %v303_v27, %v302_v26 }
 0x201   :  { %v308_v29 = vsel %vm307_vm2, %v304_v28, %v297_v5 }
 0x202   :  { %311 = vst.msk [vmem:[#allocation8] sm:$0x3] %vm310_vm3, %v308_v29 }
 0x203   :  { %463 = shalt.err (!%p460_p0)
}
 0x204   :  { %s464_s16 = scalar_lea.hbm %s614_s6, 32 }
 0x205   :  { %p465_p1 = scmp.ne.s32.totalorder %s614_s6, %s464_s16  ;;  %p468_p2 = scmp.lt.u32.totalorder %s464_s16, %s614_s6 }
 0x207   :  { %p470_p3 = pnand %p468_p2, %p465_p1 }
 0x209   :  { %473 = shalt.err (!%p470_p3)
}
 0x20a   :  { %321 = dma.vmem_to_hbm [thread:$0]  %s319_s12, 32, %s614_s6, [#allocation4]  }
 0x20b   :  { %478 = dma.done.wait [#allocation4], 32  }
 0x20c   :  { %479 = vsyncadd [#allocation4], 4294967264 }
 0x20d   :  { %325 = vsyncpa [#allocation3], 1 }
 0x20e   :  { %326 = vsyncpa [#allocation6], 1 }
 0x20f   :  { %327 = vsyncpa [#allocation4], 1 }

</bundles_post_ra>
